<compile_context>
chip_gen: v7x
topology: tpu7x:2x2x1
jax: 0.10.0
libtpu: 0.0.40
codegen_flags: <defaults>
</compile_context>

<pallas_src>
import math
import functools

import jax
import jax.numpy as jnp
from jax import lax
from jax.experimental import pallas as pl
from jax.experimental.pallas import tpu as pltpu


def _pick_tile(dim, targets):
    """Largest target tile that evenly divides `dim`; fall back to the full dim."""
    for t in targets:
        if t <= dim and dim % t == 0:
            return t
    return dim


# ----------------------------- tiled linear (MXU) ----------------------------

def _matmul_kernel(x_ref, w_ref, o_ref, acc_ref):
    @pl.when(pl.program_id(2) == 0)
    def _init():
        acc_ref[...] = jnp.zeros_like(acc_ref)

    acc_ref[...] += jnp.dot(x_ref[...], w_ref[...], preferred_element_type=jnp.float32)

    @pl.when(pl.program_id(2) == pl.num_programs(2) - 1)
    def _store():
        o_ref[...] = acc_ref[...].astype(o_ref.dtype)


def pallas_linear(x, w):
    """y = x @ w (w stored as (in, out)); fp32 accumulation, output keeps x.dtype."""
    M, K = x.shape
    K2, N = w.shape
    assert K == K2
    tm = _pick_tile(M, (256, 128, 64, 32, 16, 8))
    tn = _pick_tile(N, (256, 128))          # 256-aligned preferred for v6e/v7x MXU
    tk = _pick_tile(K, (512, 256, 128))
    grid = (M // tm, N // tn, K // tk)
    return pl.pallas_call(
        _matmul_kernel,
        out_shape=jax.ShapeDtypeStruct((M, N), x.dtype),
        grid=grid,
        in_specs=[
            pl.BlockSpec((tm, tk), lambda i, j, k: (i, k)),
            pl.BlockSpec((tk, tn), lambda i, j, k: (k, j)),
        ],
        out_specs=pl.BlockSpec((tm, tn), lambda i, j, k: (i, j)),
        scratch_shapes=[pltpu.VMEM((tm, tn), jnp.float32)],
        compiler_params=pltpu.CompilerParams(
            dimension_semantics=("parallel", "parallel", "arbitrary")),
    )(x, w)


# ---------------- flash attention (causal, online softmax) -------------------

_NEG_INF = float(jnp.finfo(jnp.float32).min)


def _flash_attn_kernel(scale, tq, tkv, num_heads,
                       q_ref, k_ref, v_ref, o_ref, m_sc, l_sc, acc_sc):
    qi = pl.program_id(1)
    ki = pl.program_id(2)

    @pl.when(ki == 0)
    def _init():
        m_sc[...] = jnp.full_like(m_sc, -jnp.inf)
        l_sc[...] = jnp.zeros_like(l_sc)
        acc_sc[...] = jnp.zeros_like(acc_sc)

    # Skip kv blocks that lie entirely above the causal diagonal.
    @pl.when(ki * tkv <= qi * tq + (tq - 1))
    def _compute():
        q = q_ref[0] * scale                  # (H, tq, D) — scale folded into q (S*D work)
        k = k_ref[0]                          # (H, tkv, D)
        v = v_ref[0]
        # scores: batched over heads, contract on D — no materialized k.T
        s = lax.dot_general(q, k, (((2,), (2,)), ((0,), (0,))),
                            preferred_element_type=jnp.float32)      # (H, tq, tkv) fp32
        # causal mask generated in-kernel (no SxS mask DMA)
        row = qi * tq + lax.broadcasted_iota(jnp.int32, (tq, tkv), 0)
        col = ki * tkv + lax.broadcasted_iota(jnp.int32, (tq, tkv), 1)
        s = jnp.where((row >= col)[None, :, :], s, _NEG_INF)

        m_prev = m_sc[...]
        m_new = jnp.maximum(m_prev, jnp.max(s, axis=-1, keepdims=True))
        alpha = jnp.exp(m_prev - m_new)
        p = jnp.exp(s - m_new)
        l_sc[...] = alpha * l_sc[...] + jnp.sum(p, axis=-1, keepdims=True)
        pv = lax.dot_general(p.astype(v.dtype), v, (((2,), (1,)), ((0,), (0,))),
                             preferred_element_type=jnp.float32)     # (H, tq, D)
        acc_sc[...] = alpha * acc_sc[...] + pv
        m_sc[...] = m_new

    @pl.when(ki == pl.num_programs(2) - 1)
    def _finalize():
        inv_l = pl.reciprocal(l_sc[...], approx=True)                # EUP slot
        out = (acc_sc[...] * inv_l).astype(o_ref.dtype)              # (H, tq, D)
        # Store per head into the lane-dense (tq, H, D) output block (static unroll).
        for h in range(num_heads):
            o_ref[0, :, h, :] = out[h]


def pallas_flash_attention(q, k, v, head_dim):
    """Causal flash attention. q,k,v: (B, H, S, D) -> out: (B, S, H, D)."""
    B, H, S, D = q.shape
    scale = 1.0 / math.sqrt(head_dim)
    tq = _pick_tile(S, (128, 64, 32, 16, 8))
    tkv = _pick_tile(S, (128, 64, 32, 16, 8))
    kernel = functools.partial(_flash_attn_kernel, scale, tq, tkv, H)
    return pl.pallas_call(
        kernel,
        out_shape=jax.ShapeDtypeStruct((B, S, H, D), q.dtype),
        grid=(B, S // tq, S // tkv),
        in_specs=[
            pl.BlockSpec((1, H, tq, D), lambda b, qi, ki: (b, 0, qi, 0)),
            pl.BlockSpec((1, H, tkv, D), lambda b, qi, ki: (b, 0, ki, 0)),
            pl.BlockSpec((1, H, tkv, D), lambda b, qi, ki: (b, 0, ki, 0)),
        ],
        out_specs=pl.BlockSpec((1, tq, H, D), lambda b, qi, ki: (b, qi, 0, 0)),
        scratch_shapes=[
            pltpu.VMEM((H, tq, 1), jnp.float32),   # running max
            pltpu.VMEM((H, tq, 1), jnp.float32),   # running sum
            pltpu.VMEM((H, tq, D), jnp.float32),   # output accumulator
        ],
        compiler_params=pltpu.CompilerParams(
            dimension_semantics=("parallel", "parallel", "arbitrary")),
    )(q, k, v)


# --------------------------------- JAX glue ----------------------------------

def rotary_cos_sin(position_ids, dim, theta):
    if position_ids.ndim == 1:
        position_ids = position_ids[None, :]
    inv_freq = 1.0 / (theta ** (jnp.arange(0, dim, 2, dtype=jnp.float32) / dim))
    freqs = position_ids.astype(jnp.float32)[..., None] * inv_freq        # (B, S, D/2)
    emb = jnp.concatenate([freqs, freqs], axis=-1)                        # (B, S, D)
    return jnp.cos(emb), jnp.sin(emb)


def apply_rotary(x, cos, sin):
    # x: (B, H, S, D); cos/sin: (B, S, D)
    D = x.shape[-1]
    x1 = x[..., : D // 2]
    x2 = x[..., D // 2:]
    rot = jnp.concatenate([-x2, x1], axis=-1)
    return (x * cos[:, None] + rot * sin[:, None]).astype(x.dtype)


def quantize_and_pack_along_last_dim(x, group_size, bits):
    """JAX equivalent of KIVI's triton_quantize_and_pack_along_last_dim (with zero-range guard)."""
    lead = x.shape[:-1]
    T = x.shape[-1]
    xg = x.reshape(*lead, T // group_size, group_size)
    mn = xg.min(-1)
    mx = xg.max(-1)
    scale = (mx - mn) / (2 ** bits - 1)
    safe = jnp.where(scale > 0, scale, jnp.ones_like(scale))   # guard mx == mn
    q = jnp.round((xg - mn[..., None]) / safe[..., None])
    q = jnp.clip(q, 0, 2 ** bits - 1).astype(jnp.int32)
    q = q.reshape(*lead, T)
    feat_per_int = 32 // bits
    qp = q.reshape(*lead, T // feat_per_int, feat_per_int)
    packed = jnp.zeros(qp.shape[:-1], dtype=jnp.int32)
    for i in range(feat_per_int):
        packed = packed | (qp[..., i] << (i * bits))
    return packed, scale, mn


def llama_attention_kivi_forward(params, cfg, hidden_states, attention_mask=None,
                                 position_ids=None, use_cache=True):
    """Prefill forward (past_key_value=None) of LlamaAttention_KIVI.
    The attention kernel generates the standard causal mask in-kernel."""
    # TODO(synk): arbitrary additive attention_mask (padding masks), pretraining_tp > 1,
    # and the decode path (past_key_value != None with cuda_bmm_fA_qB_outer fused
    # dequant-matmul on the packed int cache) are not implemented here.
    B, S, Hd = hidden_states.shape
    nH = cfg["num_heads"]
    nKV = cfg["num_kv_heads"]
    D = cfg["head_dim"]
    assert nH // nKV == 1  # module asserts num_key_value_groups == 1

    x2d = hidden_states.reshape(B * S, Hd)
    q = pallas_linear(x2d, params["wq"]).reshape(B, S, nH, D).transpose(0, 2, 1, 3)
    k = pallas_linear(x2d, params["wk"]).reshape(B, S, nKV, D).transpose(0, 2, 1, 3)
    v = pallas_linear(x2d, params["wv"]).reshape(B, S, nKV, D).transpose(0, 2, 1, 3)

    kv_seq_len = k.shape[-2]
    if position_ids is None:
        position_ids = jnp.arange(S, dtype=jnp.int32)[None, :]
    cos, sin = rotary_cos_sin(position_ids, D, cfg["rope_theta"])
    q = apply_rotary(q, cos, sin)
    k = apply_rotary(k, cos, sin)

    # ---- attention core (Pallas flash kernel); output already in (B, S, nH, D) ----
    attn_output = pallas_flash_attention(q, k, v, D)

    # ---- KIVI cache construction (prefill branch; plain JAX bookkeeping) ----
    res = cfg["residual_length"]
    gs = cfg["group_size"]
    if kv_seq_len % res != 0:
        if kv_seq_len < res:
            key_states_quant, key_states_full = None, k
        else:
            key_states_quant = k[:, :, : -(kv_seq_len % res), :]
            key_states_full = k[:, :, -(kv_seq_len % res):, :]
    else:
        key_states_quant, key_states_full = k, None
    if key_states_quant is not None:
        key_states_quant_trans, key_scale_trans, key_mn_trans = quantize_and_pack_along_last_dim(
            jnp.swapaxes(key_states_quant, 2, 3), gs, cfg["k_bits"])
    else:
        key_states_quant_trans = key_scale_trans = key_mn_trans = None
    if kv_seq_len <= res:
        value_states_quant, value_states_full, value_scale, value_mn = None, v, None, None
    else:
        vq = v[:, :, :-res, :]
        value_states_full = v[:, :, -res:, :]
        value_states_quant, value_scale, value_mn = quantize_and_pack_along_last_dim(
            vq, gs, cfg["v_bits"])
    past_key_value = (key_states_quant_trans, key_states_full, key_scale_trans, key_mn_trans,
                      value_states_quant, value_states_full, value_scale, value_mn,
                      kv_seq_len) if use_cache else None

    # ---- output projection (Pallas); reshape is free (layout already (B,S,H,D)) ----
    attn_output = attn_output.reshape(B * S, nH * D)
    attn_output = pallas_linear(attn_output, params["wo"]).reshape(B, S, Hd)
    return attn_output, None, past_key_value


# -------------------------- pure-JAX reference --------------------------------

def _reference_forward(params, cfg, hidden_states, position_ids):
    B, S, Hd = hidden_states.shape
    nH, D = cfg["num_heads"], cfg["head_dim"]
    x2d = hidden_states.reshape(B * S, Hd).astype(jnp.float32)
    q = (x2d @ params["wq"]).reshape(B, S, nH, D).transpose(0, 2, 1, 3)
    k = (x2d @ params["wk"]).reshape(B, S, nH, D).transpose(0, 2, 1, 3)
    v = (x2d @ params["wv"]).reshape(B, S, nH, D).transpose(0, 2, 1, 3)
    cos, sin = rotary_cos_sin(position_ids, D, cfg["rope_theta"])
    q = apply_rotary(q, cos, sin)
    k = apply_rotary(k, cos, sin)
    s = jnp.einsum("bhqd,bhkd->bhqk", q, k) / math.sqrt(D)
    causal = jnp.tril(jnp.ones((S, S), dtype=bool))
    s = jnp.where(causal[None, None], s, jnp.finfo(jnp.float32).min)
    p = jax.nn.softmax(s, axis=-1)
    o = jnp.einsum("bhqk,bhkd->bhqd", p, v)
    o = o.transpose(0, 2, 1, 3).reshape(B * S, nH * D)
    return (o @ params["wo"]).reshape(B, S, Hd)


# ----------------------------------- main --------------------------------------

if __name__ == "__main__":
    cfg = dict(
        hidden_size=32, num_heads=4, num_kv_heads=4, head_dim=8,
        rope_theta=10000.0, k_bits=4, v_bits=4, group_size=4, residual_length=4,
    )
    B, S, Hd = 2, 8, cfg["hidden_size"]
    nH, nKV, D = cfg["num_heads"], cfg["num_kv_heads"], cfg["head_dim"]

    key = jax.random.PRNGKey(0)
    k0, k1, k2, k3, k4 = jax.random.split(key, 5)
    # deterministic weights, stored as (in, out); attention_bias=False
    params = {
        "wq": 0.02 * jax.random.normal(k0, (Hd, nH * D), jnp.float32),
        "wk": 0.02 * jax.random.normal(k1, (Hd, nKV * D), jnp.float32),
        "wv": 0.02 * jax.random.normal(k2, (Hd, nKV * D), jnp.float32),
        "wo": 0.02 * jax.random.normal(k3, (nH * D, Hd), jnp.float32),
    }
    hidden_states = jax.random.normal(k4, (B, S, Hd), jnp.float32)
    position_ids = jnp.broadcast_to(jnp.arange(S, dtype=jnp.int32), (B, S))

    out, attn_w, past_kv = llama_attention_kivi_forward(
        params, cfg, hidden_states, attention_mask=None,
        position_ids=position_ids, use_cache=True)
    out = jax.block_until_ready(out)
    for t in past_kv:
        if isinstance(t, jax.Array):
            jax.block_until_ready(t)
    assert out.shape == (B, S, Hd)

    # correctness check of the Pallas hot path against a plain-JAX reference
    ref = _reference_forward(params, cfg, hidden_states, position_ids)
    err = float(jnp.max(jnp.abs(out - ref)))
    assert err < 1e-2, f"max abs error vs reference: {err}"

    print("KERNEL_OK")
</pallas_src>

<mosaic_0001>
module attributes {stable_mosaic.version = 11 : i64} {
  func.func @_matmul_kernel(%arg0: i32, %arg1: i32, %arg2: i32, %arg3: memref<16x32xf32, #tpu.memory_space<vmem>>, %arg4: memref<32x32xf32, #tpu.memory_space<vmem>>, %arg5: memref<16x32xf32, #tpu.memory_space<vmem>>, %arg6: memref<16x32xf32, #tpu.memory_space<vmem>>) attributes {dimension_semantics = [#tpu.dimension_semantics<parallel>, #tpu.dimension_semantics<parallel>, #tpu.dimension_semantics<arbitrary>], iteration_bounds = array<i64: 1, 1, 1>, scalar_prefetch = 0 : i64, scratch_operands = 1 : i64, tpu.core_type = #tpu.core_type<tc>, window_params = [{transform_indices = @transform_0, window_bounds = array<i64: 16, 32>}, {transform_indices = @transform_1, window_bounds = array<i64: 32, 32>}, {transform_indices = @transform_2, window_bounds = array<i64: 16, 32>}]} {
    %c0_i32 = arith.constant 0 : i32
    %0 = arith.cmpi eq, %arg2, %c0_i32 : i32
    %1 = arith.extui %0 : i1 to i32
    %c0_i32_0 = arith.constant 0 : i32
    %2 = arith.cmpi ne, %1, %c0_i32_0 : i32
    scf.if %2 {
      %cst_10 = arith.constant 0.000000e+00 : f32
      %12 = vector.broadcast %cst_10 : f32 to vector<16x32xf32>
      %c0_11 = arith.constant 0 : index
      %c0_12 = arith.constant 0 : index
      %13 = vector.load %arg6[%c0_11, %c0_12] : memref<16x32xf32, #tpu.memory_space<vmem>>, vector<16x32xf32>
      tpu.vector_store %arg6[%c0_11, %c0_12], %12 {strides = array<i32>} : memref<16x32xf32, #tpu.memory_space<vmem>>, vector<16x32xf32>,
    } else {
    }
    %c0 = arith.constant 0 : index
    %c0_1 = arith.constant 0 : index
    %3 = vector.load %arg6[%c0, %c0_1] : memref<16x32xf32, #tpu.memory_space<vmem>>, vector<16x32xf32>
    %c0_2 = arith.constant 0 : index
    %c0_3 = arith.constant 0 : index
    %4 = vector.load %arg3[%c0_2, %c0_3] : memref<16x32xf32, #tpu.memory_space<vmem>>, vector<16x32xf32>
    %c0_4 = arith.constant 0 : index
    %c0_5 = arith.constant 0 : index
    %5 = vector.load %arg4[%c0_4, %c0_5] : memref<32x32xf32, #tpu.memory_space<vmem>>, vector<32x32xf32>
    %cst = arith.constant dense<0.000000e+00> : vector<16x32xf32>
    %6 = tpu.matmul %4, %5, %cst {dimension_numbers = #tpu.dot_dimension_numbers<[1], [0], [0], [1], [0, 0, 1, 1], [], []>} : vector<16x32xf32>, vector<32x32xf32>, vector<16x32xf32> -> vector<16x32xf32>
    %7 = arith.addf %3, %6 : vector<16x32xf32>
    %c0_6 = arith.constant 0 : index
    %c0_7 = arith.constant 0 : index
    %8 = vector.load %arg6[%c0_6, %c0_7] : memref<16x32xf32, #tpu.memory_space<vmem>>, vector<16x32xf32>
    tpu.vector_store %arg6[%c0_6, %c0_7], %7 {strides = array<i32>} : memref<16x32xf32, #tpu.memory_space<vmem>>, vector<16x32xf32>,
    %c0_i32_8 = arith.constant 0 : i32
    %9 = arith.cmpi eq, %arg2, %c0_i32_8 : i32
    %10 = arith.extui %9 : i1 to i32
    %c0_i32_9 = arith.constant 0 : i32
    %11 = arith.cmpi ne, %10, %c0_i32_9 : i32
    scf.if %11 {
      %c0_10 = arith.constant 0 : index
      %c0_11 = arith.constant 0 : index
      %12 = vector.load %arg6[%c0_10, %c0_11] : memref<16x32xf32, #tpu.memory_space<vmem>>, vector<16x32xf32>
      %c0_12 = arith.constant 0 : index
      %c0_13 = arith.constant 0 : index
      %13 = vector.load %arg5[%c0_12, %c0_13] : memref<16x32xf32, #tpu.memory_space<vmem>>, vector<16x32xf32>
      tpu.vector_store %arg5[%c0_12, %c0_13], %12 {strides = array<i32>} : memref<16x32xf32, #tpu.memory_space<vmem>>, vector<16x32xf32>,
    } else {
    }
    return
  }
  func.func @transform_0(%arg0: i32, %arg1: i32, %arg2: i32) -> (i32, i32) {
    %c0_i32 = arith.constant 0 : i32
    return %arg0, %arg2 : i32, i32
  }
  func.func @transform_1(%arg0: i32, %arg1: i32, %arg2: i32) -> (i32, i32) {
    %c0_i32 = arith.constant 0 : i32
    return %arg2, %arg1 : i32, i32
  }
  func.func @transform_2(%arg0: i32, %arg1: i32, %arg2: i32) -> (i32, i32) {
    %c0_i32 = arith.constant 0 : i32
    return %arg0, %arg1 : i32, i32
  }
}

</mosaic_0001>

<bundles_post_ra>
// kernel: tpu_custom_call.1
= control target key start
LH: loop header
LB: loop body
LE: loop exit
PB: predicated region body
PF: predicated region fallthrough
CT: control target
= control target key end

     0   :  { %7 = vsyncpa [#allocation4], 0  ;;  %s345_s0 = inlined_call_operand.hbm [shape: f32[16,32], index: 0, kind: input, shape index: {}]   ;;  %s346_s1 = inlined_call_operand.hbm [shape: f32[32,32], index: 1, kind: input, shape index: {}]   ;;  %s347_s2 = inlined_call_operand.hbm [shape: f32[16,32], index: 2, kind: output, shape index: {}]  }
   0x1   :  { %8 = vsyncpa [#allocation7], 0 }
   0x2   :  { %9 = vsyncpa [#allocation5], 0  ;;  %s271_s9 = smov [#allocation3]   ;;  %s199_s13 = scalar_lea.hbm %s345_s0, 256 }
   0x3   :  { %s15_s10 = sshll.u32 %s271_s9, 4  ;;  %p200_p0 = scmp.ne.s32.totalorder %s345_s0, %s199_s13  ;;  %s16_s10 = int_to_ptr.vmem [resolvable:$true] %s15_s10 }
   0x4   :  { %p203_p1 = scmp.lt.u32.totalorder %s199_s13, %s345_s0 }
   0x6   :  { %p205_p2 = pnand %p203_p1, %p200_p0 }
   0x8   :  { %208 = shalt.err (!%p205_p2)
}
   0x9   :  { %s209_s18 = scalar_lea.vmem %s16_s10, 256  ;;  %p214_p4 = scmp.lt.s32.totalorder %s16_s10, %s16_s10 }
   0xa   :  { %p210_p3 = scmp.ne.s32.totalorder %s16_s10, %s209_s18  ;;  %p215_p5 = scmp.lt.s32.totalorder %s209_s18, %s209_s18 }
   0xc   :  { %p216_p6 = por %p215_p5, %p214_p4 }
   0xe   :  { %p217_p7 = pnand %p216_p6, %p210_p3 }
  0x10   :  { %220 = shalt.err (!%p217_p7)
}
  0x11   :  { %s272_s19 = smov 128   ;;  %s273_s20 = smov 8  }
  0x12   :  { %21 = dma.hbm_to_vmem [thread:$0]  %s345_s0, 256, %s16_s10, [#allocation4], %s272_s19, %s272_s19, %s273_s20  }
  0x13   :  { %s274_s23 = smov [#allocation6]   ;;  %s221_s27 = scalar_lea.hbm %s346_s1, 512 }
  0x14   :  { %s27_s24 = sshll.u32 %s274_s23, 4  ;;  %p222_p8 = scmp.ne.s32.totalorder %s346_s1, %s221_s27  ;;  %s28_s24 = int_to_ptr.vmem [resolvable:$true] %s27_s24 }
  0x15   :  { %p225_p9 = scmp.lt.u32.totalorder %s221_s27, %s346_s1 }
  0x17   :  { %p227_p10 = pnand %p225_p9, %p222_p8 }
  0x19   :  { %230 = shalt.err (!%p227_p10)
}
  0x1a   :  { %s231_s4 = scalar_lea.vmem %s28_s24, 512  ;;  %p236_p12 = scmp.lt.s32.totalorder %s28_s24, %s28_s24 }
  0x1b   :  { %p232_p11 = scmp.ne.s32.totalorder %s28_s24, %s231_s4  ;;  %p237_p13 = scmp.lt.s32.totalorder %s231_s4, %s231_s4 }
  0x1d   :  { %p238_p0 = por %p237_p13, %p236_p12 }
  0x1f   :  { %p239_p1 = pnand %p238_p0, %p232_p11 }
  0x21   :  { %242 = shalt.err (!%p239_p1)
}
  0x22   :  { %33 = dma.hbm_to_vmem [thread:$0]  %s346_s1, 512, %s28_s24, [#allocation7], %s272_s19, %s272_s19, %s273_s20  }
  0x23   :  { %265 = dma.done.wait [#allocation4], 256  }
  0x24   :  { %266 = vsyncadd [#allocation4], 4294967040 }
  0x25   :  { %267 = dma.done.wait [#allocation7], 512  }
  0x26   :  { %268 = vsyncadd [#allocation7], 4294966784  ;;  %vm44_vm0 = vcmask 261120   ;;  %v275_v0 = vmov 0.0   ;;  %v51_v1 = vld [vmem:[#allocation6] sm:$0xff]  ;;  %v52_v2 = vld [vmem:[#allocation6 + $0x8] sm:$0xff] }
  0x27   :  { %46 = vst.msk [vmem:[#allocation2 + $0x8] sm:$0xff] %vm44_vm0, %v275_v0  ;;  %45 = vst.msk [vmem:[#allocation2] sm:$0xff] %vm44_vm0, %v275_v0  ;;  %v53_v3 = vld [vmem:[#allocation6 + $0x10] sm:$0xff]  ;;  %v185_v4 = vpack.c.bf16 %v52_v2, %v51_v1  ;;  %v54_v5 = vld [vmem:[#allocation6 + $0x18] sm:$0xff]  ;;  %s276_s1 = smov [#allocation8]  }
  0x28   :  { %v49_v6 = vld [vmem:[#allocation3] sm:$0xff]  ;;  %v189_v7 = vpack.c.bf16 %v54_v5, %v53_v3  ;;  %v50_v8 = vld [vmem:[#allocation3 + $0x8] sm:$0xff]  ;;  %s153_s6 = sshll.u32 %s276_s1, 4  ;;  %s154_s6 = int_to_ptr.vmem [resolvable:$true] %s153_s6 }
  0x29   :  { %182 = vmatprep.mubr.msk.f32.mxu0 %vm44_vm0, %v49_v6  ;;  %186 = vmatprep.subr.bf16.mxu0 %v185_v4  ;;  %s243_s7 = scalar_lea.vmem %s154_s6, 256  ;;  %p248_p3 = scmp.lt.s32.totalorder %s154_s6, %s154_s6 }
  0x2a   :  { %188 = vmatpush3.bf16.msra.mxu0 %v185_v4  ;;  %p244_p2 = scmp.ne.s32.totalorder %s154_s6, %s243_s7  ;;  %p249_p4 = scmp.lt.s32.totalorder %s243_s7, %s243_s7 }
  0x2b   :  { %190 = vmatprep.subr.bf16.mxu0 %v189_v7 }
  0x2c   :  { %p250_p5 = por %p249_p4, %p248_p3 }
  0x2e   :  { %192 = vmatpush3.bf16.msra.mxu0 %v189_v7  ;;  %v48_v9 = vld [vmem:[#allocation2 + $0x8] sm:$0xff]  ;;  %v47_v10 = vld [vmem:[#allocation2] sm:$0xff]  ;;  %p251_p6 = pnand %p250_p5, %p244_p2 }
  0x31   :  { %183 = vmatmul.mubr.msk.f32.vlgmr.msra.gmra.mrb[0].mxu0 %vm44_vm0, %v50_v8 }
 0x104   :  { %v184_v11 = vpop.f32.mrb[0].mxu0 }
 0x105   :  { %v138_v12 = vadd.f32 %v184_v11, %v48_v9  ;;  %v128_v13 = vpop.f32.mrb[1].mxu0 }
 0x106   :  { %v137_v14 = vadd.f32 %v128_v13, %v47_v10 }
 0x107   :  { %140 = vst.msk [vmem:[#allocation2 + $0x8] sm:$0xff] %vm44_vm0, %v138_v12 }
 0x108   :  { %139 = vst.msk [vmem:[#allocation2] sm:$0xff] %vm44_vm0, %v137_v14 }
 0x10e   :  { %v145_v15 = vld [vmem:[#allocation2 + $0x8] sm:$0xff] }
 0x10f   :  { %v144_v16 = vld [vmem:[#allocation2] sm:$0xff]  ;;  %147 = vst.msk [vmem:[#allocation8 + $0x8] sm:$0xff] %vm44_vm0, %v145_v15 }
 0x110   :  { %146 = vst.msk [vmem:[#allocation8] sm:$0xff] %vm44_vm0, %v144_v16 }
 0x111   :  { %254 = shalt.err (!%p251_p6)
}
 0x112   :  { %s255_s10 = scalar_lea.hbm %s347_s2, 256 }
 0x113   :  { %p256_p7 = scmp.ne.s32.totalorder %s347_s2, %s255_s10  ;;  %p259_p8 = scmp.lt.u32.totalorder %s255_s10, %s347_s2 }
 0x115   :  { %p261_p9 = pnand %p259_p8, %p256_p7 }
 0x117   :  { %264 = shalt.err (!%p261_p9)
}
 0x118   :  { %159 = dma.vmem_to_hbm [thread:$0]  %s154_s6, 256, %s347_s2, [#allocation5], %s272_s19, %s272_s19, %s273_s20  }
 0x119   :  { %269 = dma.done.wait [#allocation5], 256  }
 0x11a   :  { %270 = vsyncadd [#allocation5], 4294967040 }
 0x11b   :  { %163 = vsyncpa [#allocation4], 1 }
 0x11c   :  { %164 = vsyncpa [#allocation7], 1 }
 0x11d   :  { %165 = vsyncpa [#allocation5], 1 }

</bundles_post_ra>
